<compile_context>
chip_gen: v7x
topology: tpu7x:2x2x1
jax: 0.10.0
libtpu: 0.0.40
codegen_flags: <defaults>
</compile_context>

<pallas_src>
import jax
import jax.numpy as jnp
from jax.experimental import pallas as pl
from jax.experimental.pallas import tpu as pltpu


def _round_up(x, m):
    return ((x + m - 1) // m) * m


def _round_down(x, m):
    return (x // m) * m


def _position_attn_kernel(q_ref, w1_ref, b1_ref, w2_ref, b2_ref,
                          m_ref, pmean_ref, v_ref, o_ref):
    # q: (Bt, dim)            w1: (dim, dim//2)   b1: (1, dim//2)
    # w2: (dim//2, H*L)       b2: (1, H*L)
    # M: (H*L, H*L) block-diagonal head indicator (seg @ seg.T)
    # pmean: (H*L, L) with pmean[h*L + l, l] = 1/H
    # v: (Bt, L, D)  o: (Bt, D)
    f32 = jnp.float32
    q = q_ref[...].astype(f32)          # native-dtype DMA, VPU cast (hidden)

    # ---- MLP: Linear -> ReLU -> Linear (MXU matmuls, f32 accumulation) ----
    h1 = jnp.dot(q, w1_ref[...], preferred_element_type=f32) + b1_ref[...]
    h1 = jnp.maximum(h1, 0.0)
    logits = jnp.dot(h1, w2_ref[...], preferred_element_type=f32) + b2_ref[...]
    # logits: (Bt, H*L), flat index = h*L + l (row-major, matches .view(B,H,L))

    # ---- vectorized per-head softmax over the L locations ----
    # Stabilization with a single global row max (exact in real arithmetic:
    # softmax is shift-invariant per head).  NOTE: a head whose max logit sits
    # ~88+ below the row max underflows entirely and the denom clamp below then
    # zeroes that head; an exact per-head (segmented) max would cost H extra
    # cross-lane reductions per tile, so it is intentionally not done here --
    # fine for well-scaled MLP logits (inference).
    m = jnp.max(logits, axis=-1, keepdims=True)
    e = jnp.exp(logits - m)                                           # (Bt, H*L)
    # Per-head denominators with ONE matmul against the block-diagonal M.
    denom = jnp.dot(e, m_ref[...], preferred_element_type=f32)        # (Bt, H*L)
    denom = jnp.maximum(denom, 1e-30)   # guard fully-underflowed head -> no NaN
    attn = e * pl.reciprocal(denom, approx=True)                      # (Bt, H*L)
    # Mean over heads folded into one matmul.
    attn_mean = jnp.dot(attn, pmean_ref[...], preferred_element_type=f32)  # (Bt, L)

    # ---- weighted sum over locations: (Bt, L, D) * (Bt, L, 1) -> sum over L
    # (broadcast-multiply + reduce is right for small L; an einsum contraction
    #  only pays off for L >= ~32.)
    v = v_ref[...].astype(f32)          # native-dtype DMA, VPU cast (hidden)
    weighted = jnp.sum(v * attn_mean[:, :, None], axis=1)             # (Bt, D)
    o_ref[...] = weighted.astype(o_ref.dtype)


def position_attn(query, value, w1, b1, w2, b2, *, num_attn, num_loc,
                  b_tile=None):
    f32 = jnp.float32
    B, dim = query.shape
    L, H = num_loc, num_attn
    assert value.shape[0] == B and value.shape[1] == L
    dim_h = w1.shape[1]
    HL = w2.shape[1]
    assert HL == H * L

    # Flatten any trailing feature dims of value; restored at the end.
    trailing = value.shape[2:]
    if value.ndim != 3:
        value = value.reshape(B, L, -1)
    D = value.shape[2]

    # Tiny parameters / constants stay f32 and resident in VMEM.  The big
    # operands (query, value) are passed through untouched: no pad, no cast.
    w1 = w1.astype(f32)
    b1 = b1.astype(f32)
    w2 = w2.astype(f32)
    b2 = b2.astype(f32)

    heads = jnp.arange(HL, dtype=jnp.int32) // L
    locs = jnp.arange(HL, dtype=jnp.int32) % L
    # Block-diagonal per-head-sum indicator: M = seg @ seg.T, shape (HL, HL).
    M = (heads[:, None] == heads[None, :]).astype(f32)
    # Mean over heads folded into one matmul: pmean[h*L + l, l] = 1/H.
    pmean = (locs[:, None] == jnp.arange(L, dtype=jnp.int32)[None, :]).astype(f32) / H

    # ---- generation-aware tile / VMEM sizing ----
    try:
        vmem_cap = int(pltpu.get_tpu_info().vmem_capacity_bytes)
    except Exception:  # pragma: no cover - fallback if query unsupported
        vmem_cap = 64 * 1024 * 1024        # v7x per-TensorCore; safe lower bound
    vmem_limit = (vmem_cap * 3) // 4       # ~48 MiB on v7x, ~96 MiB on v5e/v6e

    v_item = jnp.dtype(value.dtype).itemsize
    q_item = jnp.dtype(query.dtype).itemsize
    sub = max(8, 32 // v_item)             # sublane multiple for this dtype
    # VMEM footprint per batch row of value (accounts for (sub,128) tile pad).
    row_bytes = _round_up(L, sub) * _round_up(D, 128) * v_item

    if b_tile is None:
        # Double-buffered value dominates VMEM; target ~capacity/6 per tile.
        target = min(16 * 1024 * 1024, vmem_cap // 6)
        b_tile = max(8, _round_down(target // row_bytes, 8))
        # Keep >= 4 grid steps when B allows (v7x megacore sharding + pipeline
        # overlap) while keeping each value tile >= ~1 MiB so the per-step
        # overhead stays negligible on every generation.
        min_rows = max(8, _round_up(pl.cdiv(1 << 20, row_bytes), 8))
        if B >= 4 * min_rows:
            b_tile = min(b_tile, max(min_rows, _round_down(B // 4, 8)))
    if b_tile >= B:
        b_tile = B          # single block; block dim == full array dim is legal
    else:
        b_tile = max(8, _round_down(b_tile, 8))
    grid = (pl.cdiv(B, b_tile),)   # partial last block handled by Pallas masking

    in_specs = [
        pl.BlockSpec((b_tile, dim), lambda i: (i, 0)),        # query (tiled, native dtype)
        pl.BlockSpec((dim, dim_h), lambda i: (0, 0)),         # w1 (resident)
        pl.BlockSpec((1, dim_h), lambda i: (0, 0)),           # b1
        pl.BlockSpec((dim_h, HL), lambda i: (0, 0)),          # w2
        pl.BlockSpec((1, HL), lambda i: (0, 0)),              # b2
        pl.BlockSpec((HL, HL), lambda i: (0, 0)),             # M (block-diag)
        pl.BlockSpec((HL, L), lambda i: (0, 0)),              # pmean
        pl.BlockSpec((b_tile, L, D), lambda i: (i, 0, 0)),    # value (tiled, native dtype)
    ]
    out_specs = pl.BlockSpec((b_tile, D), lambda i: (i, 0))

    flops = 2 * B * (dim * dim_h + dim_h * HL + HL * HL + HL * L + L * D)
    bytes_accessed = (B * dim * q_item + B * L * D * v_item + B * D * v_item
                      + 4 * (dim * dim_h + dim_h + dim_h * HL + HL
                             + HL * HL + HL * L))
    cost = pl.CostEstimate(flops=int(flops),
                           transcendentals=int(B * HL),
                           bytes_accessed=int(bytes_accessed))

    out = pl.pallas_call(
        _position_attn_kernel,
        out_shape=jax.ShapeDtypeStruct((B, D), value.dtype),
        grid=grid,
        in_specs=in_specs,
        out_specs=out_specs,
        compiler_params=pltpu.CompilerParams(
            dimension_semantics=("parallel",),
            vmem_limit_bytes=int(vmem_limit)),
        cost_estimate=cost,
    )(query, w1, b1, w2, b2, M, pmean, value)

    # TODO(synk): the PyTorch module also caches `self.attn`; expose the
    # (B, H, L) attention map as a second kernel output if callers need it.
    if len(trailing) != 1:
        out = out.reshape((B,) + trailing)
    return out


def position_attn_ref(query, value, w1, b1, w2, b2, *, num_attn, num_loc):
    """Pure-JAX reference mirroring the PyTorch forward."""
    B = query.shape[0]
    h1 = jnp.maximum(query @ w1 + b1[0], 0.0)
    logits = (h1 @ w2 + b2[0]).reshape(B, num_attn, num_loc)
    attn = jax.nn.softmax(logits, axis=2)
    attn_mean = attn.mean(axis=1)                          # (B, L)
    return (value * attn_mean[:, :, None]).sum(axis=1)     # (B, D)


if __name__ == "__main__":
    # Small shapes consistent with the module:
    #   dim=32, num_attn=4, num_loc=8, batch=2, value feature D=16
    B, dim, H, L, D = 2, 32, 4, 8, 16

    key = jax.random.PRNGKey(0)
    kq, kv, k1, k2, k3, k4 = jax.random.split(key, 6)

    query = jax.random.normal(kq, (B, dim), dtype=jnp.float32)
    value = jax.random.normal(kv, (B, L, D), dtype=jnp.float32)

    # Deterministic parameter init (shapes from nn.Linear(dim, dim//2),
    # nn.Linear(dim//2, H*L)); stored as (in, out).
    w1 = jax.random.normal(k1, (dim, dim // 2), dtype=jnp.float32) * 0.1
    b1 = jax.random.normal(k2, (1, dim // 2), dtype=jnp.float32) * 0.1
    w2 = jax.random.normal(k3, (dim // 2, H * L), dtype=jnp.float32) * 0.1
    b2 = jax.random.normal(k4, (1, H * L), dtype=jnp.float32) * 0.1

    out = position_attn(query, value, w1, b1, w2, b2, num_attn=H, num_loc=L)
    out = jax.block_until_ready(out)

    ref = position_attn_ref(query, value, w1, b1, w2, b2, num_attn=H, num_loc=L)
    assert out.shape == (B, D)
    # approx-reciprocal softmax denominator => slightly looser tolerance.
    assert jnp.allclose(out, ref, atol=3e-3, rtol=3e-3), (out, ref)

    print("KERNEL_OK")
</pallas_src>

<mosaic_0001>
module attributes {stable_mosaic.version = 11 : i64} {
  func.func @_position_attn_kernel(%arg0: i32, %arg1: memref<2x32xf32, #tpu.memory_space<vmem>>, %arg2: memref<32x16xf32, #tpu.memory_space<vmem>>, %arg3: memref<1x16xf32, #tpu.memory_space<vmem>>, %arg4: memref<16x32xf32, #tpu.memory_space<vmem>>, %arg5: memref<1x32xf32, #tpu.memory_space<vmem>>, %arg6: memref<32x32xf32, #tpu.memory_space<vmem>>, %arg7: memref<32x8xf32, #tpu.memory_space<vmem>>, %arg8: memref<2x8x16xf32, #tpu.memory_space<vmem>>, %arg9: memref<2x16xf32, #tpu.memory_space<vmem>>) attributes {dimension_semantics = [#tpu.dimension_semantics<parallel>], iteration_bounds = array<i64: 1>, scalar_prefetch = 0 : i64, scratch_operands = 0 : i64, tpu.core_type = #tpu.core_type<tc>, window_params = [{transform_indices = @transform_0, window_bounds = array<i64: 2, 32>}, {pipeline_mode = #tpu.pipeline_mode<synchronous>, transform_indices = @transform_1, window_bounds = array<i64: 32, 16>}, {pipeline_mode = #tpu.pipeline_mode<synchronous>, transform_indices = @transform_2, window_bounds = array<i64: 1, 16>}, {pipeline_mode = #tpu.pipeline_mode<synchronous>, transform_indices = @transform_3, window_bounds = array<i64: 16, 32>}, {pipeline_mode = #tpu.pipeline_mode<synchronous>, transform_indices = @transform_4, window_bounds = array<i64: 1, 32>}, {pipeline_mode = #tpu.pipeline_mode<synchronous>, transform_indices = @transform_5, window_bounds = array<i64: 32, 32>}, {pipeline_mode = #tpu.pipeline_mode<synchronous>, transform_indices = @transform_6, window_bounds = array<i64: 32, 8>}, {transform_indices = @transform_7, window_bounds = array<i64: 2, 8, 16>}, {transform_indices = @transform_8, window_bounds = array<i64: 2, 16>}]} {
    %c0 = arith.constant 0 : index
    %c0_0 = arith.constant 0 : index
    %0 = vector.load %arg1[%c0, %c0_0] : memref<2x32xf32, #tpu.memory_space<vmem>>, vector<2x32xf32>
    %c0_1 = arith.constant 0 : index
    %c0_2 = arith.constant 0 : index
    %1 = vector.load %arg2[%c0_1, %c0_2] : memref<32x16xf32, #tpu.memory_space<vmem>>, vector<32x16xf32>
    %cst = arith.constant dense<0.000000e+00> : vector<2x16xf32>
    %2 = tpu.matmul %0, %1, %cst {dimension_numbers = #tpu.dot_dimension_numbers<[1], [0], [0], [1], [0, 0, 1, 1], [], []>} : vector<2x32xf32>, vector<32x16xf32>, vector<2x16xf32> -> vector<2x16xf32>
    %c0_3 = arith.constant 0 : index
    %c0_4 = arith.constant 0 : index
    %3 = vector.load %arg3[%c0_3, %c0_4] : memref<1x16xf32, #tpu.memory_space<vmem>>, vector<1x16xf32>
    %4 = vector.broadcast %3 : vector<1x16xf32> to vector<2x16xf32>
    %5 = arith.addf %2, %4 : vector<2x16xf32>
    %cst_5 = arith.constant 0.000000e+00 : f32
    %6 = vector.broadcast %cst_5 : f32 to vector<2x16xf32>
    %7 = arith.maximumf %5, %6 : vector<2x16xf32>
    %c0_6 = arith.constant 0 : index
    %c0_7 = arith.constant 0 : index
    %8 = vector.load %arg4[%c0_6, %c0_7] : memref<16x32xf32, #tpu.memory_space<vmem>>, vector<16x32xf32>
    %cst_8 = arith.constant dense<0.000000e+00> : vector<2x32xf32>
    %9 = tpu.matmul %7, %8, %cst_8 {dimension_numbers = #tpu.dot_dimension_numbers<[1], [0], [0], [1], [0, 0, 1, 1], [], []>} : vector<2x16xf32>, vector<16x32xf32>, vector<2x32xf32> -> vector<2x32xf32>
    %c0_9 = arith.constant 0 : index
    %c0_10 = arith.constant 0 : index
    %10 = vector.load %arg5[%c0_9, %c0_10] : memref<1x32xf32, #tpu.memory_space<vmem>>, vector<1x32xf32>
    %11 = vector.broadcast %10 : vector<1x32xf32> to vector<2x32xf32>
    %12 = arith.addf %9, %11 : vector<2x32xf32>
    %cst_11 = arith.constant dense<0xFF800000> : vector<2xf32>
    %13 = vector.multi_reduction <maximumf>, %12, %cst_11 [1] : vector<2x32xf32> to vector<2xf32>
    %14 = vector.shape_cast %13 : vector<2xf32> to vector<2x1xf32>
    %15 = vector.broadcast %14 : vector<2x1xf32> to vector<2x32xf32>
    %16 = arith.subf %12, %15 : vector<2x32xf32>
    %17 = math.exp %16 : vector<2x32xf32>
    %c0_12 = arith.constant 0 : index
    %c0_13 = arith.constant 0 : index
    %18 = vector.load %arg6[%c0_12, %c0_13] : memref<32x32xf32, #tpu.memory_space<vmem>>, vector<32x32xf32>
    %cst_14 = arith.constant dense<0.000000e+00> : vector<2x32xf32>
    %19 = tpu.matmul %17, %18, %cst_14 {dimension_numbers = #tpu.dot_dimension_numbers<[1], [0], [0], [1], [0, 0, 1, 1], [], []>} : vector<2x32xf32>, vector<32x32xf32>, vector<2x32xf32> -> vector<2x32xf32>
    %cst_15 = arith.constant 1.000000e-30 : f32
    %20 = vector.broadcast %cst_15 : f32 to vector<2x32xf32>
    %21 = arith.maximumf %19, %20 : vector<2x32xf32>
    %22 = tpu.reciprocal %21 {approx = true} : vector<2x32xf32> -> vector<2x32xf32>
    %23 = arith.mulf %17, %22 : vector<2x32xf32>
    %c0_16 = arith.constant 0 : index
    %c0_17 = arith.constant 0 : index
    %24 = vector.load %arg7[%c0_16, %c0_17] : memref<32x8xf32, #tpu.memory_space<vmem>>, vector<32x8xf32>
    %cst_18 = arith.constant dense<0.000000e+00> : vector<2x8xf32>
    %25 = tpu.matmul %23, %24, %cst_18 {dimension_numbers = #tpu.dot_dimension_numbers<[1], [0], [0], [1], [0, 0, 1, 1], [], []>} : vector<2x32xf32>, vector<32x8xf32>, vector<2x8xf32> -> vector<2x8xf32>
    %c0_19 = arith.constant 0 : index
    %c0_20 = arith.constant 0 : index
    %c0_21 = arith.constant 0 : index
    %26 = vector.load %arg8[%c0_19, %c0_20, %c0_21] : memref<2x8x16xf32, #tpu.memory_space<vmem>>, vector<2x8x16xf32>
    %27 = vector.shape_cast %25 : vector<2x8xf32> to vector<2x8x1xf32>
    %28 = vector.broadcast %27 : vector<2x8x1xf32> to vector<2x8x16xf32>
    %29 = arith.mulf %26, %28 : vector<2x8x16xf32>
    %cst_22 = arith.constant dense<0.000000e+00> : vector<2x16xf32>
    %30 = vector.multi_reduction <add>, %29, %cst_22 [1] : vector<2x8x16xf32> to vector<2x16xf32>
    %c0_23 = arith.constant 0 : index
    %c0_24 = arith.constant 0 : index
    %31 = vector.load %arg9[%c0_23, %c0_24] : memref<2x16xf32, #tpu.memory_space<vmem>>, vector<2x16xf32>
    tpu.vector_store %arg9[%c0_23, %c0_24], %30 {strides = array<i32>} : memref<2x16xf32, #tpu.memory_space<vmem>>, vector<2x16xf32>,
    return
  }
  func.func @transform_0(%arg0: i32) -> (i32, i32) {
    %c0_i32 = arith.constant 0 : i32
    %c0_i32_0 = arith.constant 0 : i32
    return %arg0, %c0_i32 : i32, i32
  }
  func.func @transform_1(%arg0: i32) -> (i32, i32) {
    %c0_i32 = arith.constant 0 : i32
    %c0_i32_0 = arith.constant 0 : i32
    %c0_i32_1 = arith.constant 0 : i32
    return %c0_i32, %c0_i32_0 : i32, i32
  }
  func.func @transform_2(%arg0: i32) -> (i32, i32) {
    %c0_i32 = arith.constant 0 : i32
    %c0_i32_0 = arith.constant 0 : i32
    %c0_i32_1 = arith.constant 0 : i32
    return %c0_i32, %c0_i32_0 : i32, i32
  }
  func.func @transform_3(%arg0: i32) -> (i32, i32) {
    %c0_i32 = arith.constant 0 : i32
    %c0_i32_0 = arith.constant 0 : i32
    %c0_i32_1 = arith.constant 0 : i32
    return %c0_i32, %c0_i32_0 : i32, i32
  }
  func.func @transform_4(%arg0: i32) -> (i32, i32) {
    %c0_i32 = arith.constant 0 : i32
    %c0_i32_0 = arith.constant 0 : i32
    %c0_i32_1 = arith.constant 0 : i32
    return %c0_i32, %c0_i32_0 : i32, i32
  }
  func.func @transform_5(%arg0: i32) -> (i32, i32) {
    %c0_i32 = arith.constant 0 : i32
    %c0_i32_0 = arith.constant 0 : i32
    %c0_i32_1 = arith.constant 0 : i32
    return %c0_i32, %c0_i32_0 : i32, i32
  }
  func.func @transform_6(%arg0: i32) -> (i32, i32) {
    %c0_i32 = arith.constant 0 : i32
    %c0_i32_0 = arith.constant 0 : i32
    %c0_i32_1 = arith.constant 0 : i32
    return %c0_i32, %c0_i32_0 : i32, i32
  }
  func.func @transform_7(%arg0: i32) -> (i32, i32, i32) {
    %c0_i32 = arith.constant 0 : i32
    %c0_i32_0 = arith.constant 0 : i32
    %c0_i32_1 = arith.constant 0 : i32
    return %arg0, %c0_i32, %c0_i32_0 : i32, i32, i32
  }
  func.func @transform_8(%arg0: i32) -> (i32, i32) {
    %c0_i32 = arith.constant 0 : i32
    %c0_i32_0 = arith.constant 0 : i32
    return %arg0, %c0_i32 : i32, i32
  }
}

</mosaic_0001>

<bundles_post_ra>
// kernel: tpu_custom_call.1
= control target key start
LH: loop header
LB: loop body
LE: loop exit
PB: predicated region body
PF: predicated region fallthrough
CT: control target
= control target key end

     0   :  { %v534_v3 = vmov 0.0|0.0   ;;  %vm535_vm0 = vmmov 0   ;;  %v536_v6 = vmov 0.0   ;;  %s662_s0 = inlined_call_operand.vmem [shape: f32[2,32], index: 0, kind: input, shape index: {}]   ;;  %s663_s1 = inlined_call_operand.vmem [shape: f32[32,16], index: 1, kind: input, shape index: {}]   ;;  %s664_s2 = inlined_call_operand.vmem [shape: f32[1,16], index: 2, kind: input, shape index: {}]   ;;  %s665_s3 = inlined_call_operand.vmem [shape: f32[16,32], index: 3, kind: input, shape index: {}]   ;;  %s666_s4 = inlined_call_operand.vmem [shape: f32[1,32], index: 4, kind: input, shape index: {}]   ;;  %s667_s5 = inlined_call_operand.vmem [shape: f32[32,32], index: 5, kind: input, shape index: {}]   ;;  %s668_s6 = inlined_call_operand.vmem [shape: f32[32,8], index: 6, kind: input, shape index: {}]   ;;  %s669_s7 = inlined_call_operand.vmem [shape: f32[2,8,16], index: 7, kind: input, shape index: {}]   ;;  %s670_s8 = inlined_call_operand.hbm [shape: f32[2,16], index: 8, kind: output, shape index: {}]  }
   0x1   :  { %v31_v0 = vld [vmem:[%s663_s1] sm:$0xff]  ;;  %v32_v1 = vld [vmem:[%s663_s1 + $0x8] sm:$0xff]  ;;  %v33_v2 = vld [vmem:[%s663_s1 + $0x10] sm:$0xff]  ;;  %481 = vmatprep.subr.bf16.mxu0 %v534_v3  ;;  %449 = vmatprep.mubr.msk.f32.mxu0 %vm535_vm0, %v536_v6 }
   0x2   :  { %v482_v4 = vpack.c.bf16 %v32_v1, %v31_v0  ;;  %v34_v5 = vld [vmem:[%s663_s1 + $0x18] sm:$0xff]  ;;  %487 = vmatprep.subr.bf16.mxu1 %v534_v3  ;;  %456 = vmatprep.mubr.msk.f32.mxu1 %vm535_vm0, %v536_v6 }
   0x3   :  { %13 = vsyncpa [#allocation3], 0  ;;  %v485_v7 = vpack.c.bf16 %v34_v5, %v33_v2  ;;  %v30_v8 = vld [vmem:[%s662_s0] sm:$0x3]  ;;  %vm42_vm1 = vcmask 261120   ;;  %v118_v10 = vld [vmem:[%s665_s3 + $0x8] sm:$0xff]  ;;  %v366_v43 = vlaneseq }
   0x4   :  { %483 = vmatpush3.bf16.msra.mxu0 %v482_v4  ;;  %v117_v9 = vld [vmem:[%s665_s3] sm:$0xff]  ;;  %vm126_vm2 = vcmask 130048   ;;  %vm200_vm3 = vcmask 254976   ;;  %v208_v23 = vld [vmem:[%s667_s5 + $0x8] sm:$0xff]  ;;  %v209_v24 = vld [vmem:[%s667_s5 + $0x10] sm:$0xff]  ;;  %s537_s14 = smov [#allocation2]  }
   0x5   :  { %484 = vmatprep.subr.bf16.mxu0 %v534_v3  ;;  %v488_v11 = vpack.c.bf16 %v118_v10, %v117_v9  ;;  %v417_v12 = vld [vmem:[%s664_s2] ss:$0 sm:$0xff]  ;;  %v210_v26 = vld [vmem:[%s667_s5 + $0x18] sm:$0xff]  ;;  %v288_v33 = vld [vmem:[%s668_s6 + $0x8] sm:$0xff]  ;;  %v367_v44 = vshrl.u32 %v366_v43, 7  ;;  %vm398_vm4 = vcmask 1041409  }
   0x6   :  { %v419_v17 = vld [vmem:[%s666_s4] ss:$0 sm:$0xff]  ;;  %v494_v27 = vpack.c.bf16 %v210_v26, %v209_v24  ;;  %v289_v34 = vld [vmem:[%s668_s6 + $0x10] sm:$0xff]  ;;  %v290_v36 = vld [vmem:[%s668_s6 + $0x18] sm:$0xff]  ;;  %vm401_vm5 = vcmask 123904  }
   0x7   :  { %489 = vmatpush3.bf16.msra.mxu1 %v488_v11  ;;  %v207_v22 = vld [vmem:[%s667_s5] sm:$0xff]  ;;  %v500_v37 = vpack.c.bf16 %v290_v36, %v289_v34  ;;  %v375_v45 = vsub.s32 1, %v367_v44  ;;  %v368_v46 = vsub.s32 0, %v367_v44  ;;  %v365_v51 = vld [vmem:[%s669_s7 + $0x8] sm:$0xff] }
   0x8   :  { %486 = vmatpush3.bf16.msra.mxu0 %v485_v7  ;;  %490 = vmatprep.subr.bf16.mxu1 %v534_v3  ;;  %v491_v25 = vpack.c.bf16 %v208_v23, %v207_v22  ;;  %v287_v32 = vld [vmem:[%s668_s6] sm:$0xff] }
   0x9   :  { %496 = vmatprep.subr.bf16.mxu0 %v534_v3  ;;  %v497_v35 = vpack.c.bf16 %v288_v33, %v287_v32  ;;  %v364_v52 = vld [vmem:[%s669_s7] sm:$0xff]  ;;  %s409_s7 = sshll.u32 %s537_s14, 4  ;;  %s410_s7 = int_to_ptr.vmem [resolvable:$true] %s409_s7 }
   0xa   :  { %s510_s1 = scalar_lea.vmem %s410_s7, 32  ;;  %p515_p1 = scmp.lt.s32.totalorder %s410_s7, %s410_s7 }
   0xb   :  { %450 = vmatmul.mubr.msk.f32.vlgmr.msra.gmra.mrb[0].mxu0 %vm42_vm1, %v30_v8  ;;  %p511_p0 = scmp.ne.s32.totalorder %s410_s7, %s510_s1  ;;  %p516_p2 = scmp.lt.s32.totalorder %s510_s1, %s510_s1 }
   0xc   :  { %478 = vmatprep.mubr.msk.f32.mxu0 %vm535_vm0, %v536_v6  ;;  %498 = vmatpush3.bf16.msra.mxu0 %v497_v35 }
   0xd   :  { %499 = vmatprep.subr.bf16.mxu0 %v534_v3  ;;  %p517_p3 = por %p516_p2, %p515_p1 }
   0xf   :  { %p518_p4 = pnand %p517_p3, %p511_p0 }
  0x10   :  { %501 = vmatpush3.bf16.msra.mxu0 %v500_v37 }
  0xde   :  { %v112_v13 = vpop.f32.mrb[0].mxu0 }
  0xdf   :  { %v113_v14 = vadd.f32 %v417_v12, %v112_v13  ;;  %v451_v15 = vpop.f32.mrb[1].mxu0 }
  0xe1   :  { %v116_v16 = vmax.f32 %v113_v14, 0.0 }
  0xe3   :  { %457 = vmatmul.mubr.msk.f32.vlgmr.msra.gmra.mrb[0].mxu1 %vm126_vm2, %v116_v16 }
  0xe4   :  { %467 = vmatprep.mubr.msk.f32.mxu1 %vm535_vm0, %v536_v6  ;;  %492 = vmatpush3.bf16.msra.mxu1 %v491_v25 }
  0xe5   :  { %493 = vmatprep.subr.bf16.mxu1 %v534_v3 }
  0xe8   :  { %495 = vmatpush3.bf16.msra.mxu1 %v494_v27 }
 0x1b6   :  { %v196_v18 = vpop.f32.mrb[0].mxu1 }
 0x1b7   :  { %v197_v19 = vadd.f32 %v419_v17, %v196_v18  ;;  %v458_v20 = vpop.f32.mrb[1].mxu1 }
 0x1b9   :  { %v201_v21 = vsel %vm200_vm3, %v197_v19, -inf }
 0x1ba   :  { %202 = vmax.xlane.f32.xlu0 %v201_v21 }
 0x247   :  { %v203_v28 = vpop.xlane.xlu0 %202 }
 0x248   :  { %v204_v29 = vsub.f32 %v197_v19, %v203_v28 }
 0x24a   :  { %v205_v30 = vmul.f32 1.442695, %v204_v29 }
 0x24c   :  { %506 = vpow2.f32 %v205_v30 }
 0x256   :  { %v507_v31 = vpop.eup %506 }
 0x257   :  { %468 = vmatmul.mubr.msk.f32.vlgmr.msra.gmra.mrb[2].mxu1 %vm42_vm1, %v507_v31 }
 0x32a   :  { %v280_v38 = vpop.f32.mrb[2].mxu1 }
 0x32b   :  { %v284_v39 = vmax.f32 %v280_v38, 1e-30  ;;  %v469_v40 = vpop.f32.mrb[3].mxu1 }
 0x32d   :  { %508 = vrcp.f32 %v284_v39 }
 0x337   :  { %v509_v41 = vpop.eup %508 }
 0x338   :  { %v286_v42 = vmul.f32 %v509_v41, %v507_v31 }
 0x33a   :  { %479 = vmatmul.mubr.msk.f32.vlgmr.msra.gmra.mrb[2].mxu0 %vm42_vm1, %v286_v42 }
 0x40d   :  { %v360_v47 = vpop.f32.mrb[2].mxu0 }
 0x40e   :  { %v480_v48 = vpop.f32.mrb[3].mxu0  ;;  %v376_v49 = vrot.slane %v360_v47, %v375_v45  ;;  %v369_v50 = vrot.slane %v360_v47, %v368_v46 }
 0x410   :  { %378 = vbcast.lane.b32.xlu1 %v376_v49, 256  ;;  %371 = vbcast.lane.b32.xlu0 %v369_v50, 256 }
 0x482   :  { %v379_v53 = vpop.permute.xlu1 %378  ;;  %v372_v54 = vpop.permute.xlu0 %371 }
 0x483   :  { %v381_v55 = vmul.f32 %v379_v53, %v365_v51  ;;  %v380_v56 = vmul.f32 %v372_v54, %v364_v52 }
 0x485   :  { %v389_v57 = vsel %vm126_vm2, %v381_v55, 0.0  ;;  %v382_v58 = vsel %vm126_vm2, %v380_v56, 0.0 }
 0x486   :  { %v390_v59 = vrot.slane %v389_v57, 4  ;;  %v383_v60 = vrot.slane %v382_v58, 4 }
 0x488   :  { %v391_v61 = vadd.f32 %v390_v59, %v389_v57  ;;  %v384_v62 = vadd.f32 %v383_v60, %v382_v58 }
 0x48a   :  { %v392_v63 = vrot.slane %v391_v61, 2  ;;  %v385_v0 = vrot.slane %v384_v62, 2 }
 0x48c   :  { %v393_v1 = vadd.f32 %v392_v63, %v391_v61  ;;  %v386_v2 = vadd.f32 %v385_v0, %v384_v62 }
 0x48e   :  { %v394_v3 = vrot.slane %v393_v1, 1  ;;  %v387_v4 = vrot.slane %v386_v2, 1 }
 0x490   :  { %v388_v5 = vadd.f32 %v387_v4, %v386_v2  ;;  %v395_v6 = vadd.f32 %v394_v3, %v393_v1 }
 0x492   :  { %v399_v7 = vsel %vm398_vm4, %v395_v6, %v388_v5 }
 0x493   :  { %402 = vst.msk [vmem:[#allocation2] sm:$0x3] %vm401_vm5, %v399_v7 }
 0x494   :  { %521 = shalt.err (!%p518_p4)
}
 0x495   :  { %s522_s17 = scalar_lea.hbm %s670_s8, 32 }
 0x496   :  { %p523_p5 = scmp.ne.s32.totalorder %s670_s8, %s522_s17  ;;  %p526_p6 = scmp.lt.u32.totalorder %s522_s17, %s670_s8 }
 0x498   :  { %p528_p7 = pnand %p526_p6, %p523_p5 }
 0x49a   :  { %531 = shalt.err (!%p528_p7)
}
 0x49b   :  { %412 = dma.vmem_to_hbm [thread:$0]  %s410_s7, 32, %s670_s8, [#allocation3]  }
 0x49c   :  { %532 = dma.done.wait [#allocation3], 32  }
 0x49d   :  { %533 = vsyncadd [#allocation3], 4294967264 }
 0x49e   :  { %416 = vsyncpa [#allocation3], 1 }

</bundles_post_ra>
